<compile_context>
chip_gen: v6e
topology: v6e:2x2x1
jax: 0.10.0
libtpu: 0.0.40
codegen_flags: <defaults>
</compile_context>

<pallas_src>
import functools

import jax
import jax.numpy as jnp
from jax import lax
from jax.experimental import pallas as pl
from jax.experimental.pallas import tpu as pltpu

_VMEM_LIMIT = 32 * 1024 * 1024   # fits all tile sets below with margin on v5e/v6e/v7x


def _round_up(x, m):
    return ((x + m - 1) // m) * m


def _cparams(dim_sem):
    return pltpu.CompilerParams(dimension_semantics=dim_sem,
                                vmem_limit_bytes=_VMEM_LIMIT)


# --------------------- fused conv: implicit im2col, full-K resident ---------------------

def _conv_kernel(x_ref, w_ref, *rest, kh, kw, wp, r_out, act, slope, use_bias):
    # x_ref : (1, rows_in, Cin) bf16 — once-padded plane, row-flattened, plus slack rows
    # w_ref : (KH*KW, Cin, tCout) bf16 ;  bias_ref: (1, tCout) f32 ;  o_ref: (1, r_out, tCout)
    if use_bias:
        bias_ref, o_ref = rest
    else:
        bias_ref = None
        (o_ref,) = rest

    acc = None
    t = 0
    for i in range(kh):                      # static tap loop -> unrolled MXU matmuls
        for j in range(kw):
            a = x_ref[0, pl.ds(i * wp + j, r_out), :]          # shifted window (VMEM only)
            p = jnp.dot(a, w_ref[t], preferred_element_type=jnp.float32)
            acc = p if acc is None else acc + p
            t += 1
    if use_bias:
        acc = acc + bias_ref[...]
    if act == "relu":
        acc = jnp.maximum(acc, 0.0)
    elif act == "leaky":
        acc = jnp.where(acc >= 0.0, acc, slope * acc)
    o_ref[0] = acc.astype(o_ref.dtype)


def conv2d(x, wflat, bias, *, kh, kw, stride, pad, act=None, slope=0.2,
           out_dtype=jnp.bfloat16, pad_vec=None):
    """NHWC conv with pre-packed weights (KH*KW, Cin, Cout) bf16 and (1, Cout) f32 bias.

    Implicit im2col: the kernel reads shifted windows of the once-padded, row-flattened
    activation; tap accumulation happens entirely in VMEM.  stride > 1 computes the
    stride-1 output and subsamples at the glue level.
    """
    n, h, w, cin = x.shape
    taps, cin_w, cout = wflat.shape
    assert taps == kh * kw
    if cin_w != cin:                          # zero-padded input channels (e.g. 3 -> 8)
        x = jnp.pad(x, ((0, 0), (0, 0), (0, 0), (0, cin_w - cin)))
        if pad_vec is not None:
            pad_vec = jnp.pad(pad_vec, (0, cin_w - cin))
        cin = cin_w

    hp, wp = h + 2 * pad, w + 2 * pad
    oh1 = hp - kh + 1                         # stride-1 output extents
    oh = (hp - kh) // stride + 1
    ow = (wp - kw) // stride + 1
    rows_in = (hp + kh) * wp                  # kh*wp slack rows keep shifted reads in-bounds
    r_out = oh1 * wp

    x = x.astype(jnp.bfloat16)
    if pad_vec is None:
        xp = jnp.pad(x, ((0, 0), (pad, pad + kh), (pad, pad), (0, 0)))
    else:                                     # per-channel constant border (LPIPS fold)
        xp = jnp.broadcast_to(pad_vec.astype(jnp.bfloat16).reshape(1, 1, 1, cin),
                              (n, hp + kh, wp, cin))
        xp = lax.dynamic_update_slice(xp, x, (0, pad, pad, 0))
    xf = xp.reshape(n, rows_in, cin)

    use_bias = bias is not None
    tco = cout if cout <= 256 else 256
    operands = [xf, wflat]
    in_specs = [pl.BlockSpec((1, rows_in, cin), lambda b, co: (b, 0, 0)),
                pl.BlockSpec((taps, cin, tco), lambda b, co: (0, 0, co))]
    if use_bias:
        operands.append(bias)
        in_specs.append(pl.BlockSpec((1, tco), lambda b, co: (0, co)))

    out = pl.pallas_call(
        functools.partial(_conv_kernel, kh=kh, kw=kw, wp=wp, r_out=r_out,
                          act=act, slope=slope, use_bias=use_bias),
        out_shape=jax.ShapeDtypeStruct((n, r_out, cout), out_dtype),
        grid=(n, cout // tco),
        in_specs=in_specs,
        out_specs=pl.BlockSpec((1, r_out, tco), lambda b, co: (b, 0, co)),
        compiler_params=_cparams(("parallel", "parallel")),
    )(*operands)

    y = out.reshape(n, oh1, wp, cout)
    return y[:, : (oh - 1) * stride + 1 : stride, : (ow - 1) * stride + 1 : stride, :]


def maxpool2x2(x):
    # TODO(synk): fold the 2x2 pool into the following conv's window read.
    n, h, w, c = x.shape
    return jnp.max(x.reshape(n, h // 2, 2, w // 2, 2, c), axis=(2, 4))


# --------------------- BatchNorm + LeakyReLU (two-pass, tiled) ---------------------

def _bn_stats_kernel(x_ref, sum_ref, sq_ref):
    @pl.when(pl.program_id(0) == 0)
    def _():
        sum_ref[...] = jnp.zeros_like(sum_ref)
        sq_ref[...] = jnp.zeros_like(sq_ref)
    x = x_ref[...].astype(jnp.float32)
    sum_ref[...] += jnp.sum(x, axis=0, keepdims=True)
    sq_ref[...] += jnp.sum(x * x, axis=0, keepdims=True)


def _affine_leaky_kernel(x_ref, scale_ref, shift_ref, o_ref, *, slope):
    x = x_ref[...].astype(jnp.float32)
    y = x * scale_ref[...] + shift_ref[...]
    o_ref[...] = jnp.where(y >= 0.0, y, slope * y).astype(o_ref.dtype)


def batchnorm_leaky(x2d, gamma, beta, slope=0.2, eps=1e-5, out_dtype=jnp.bfloat16):
    m, c = x2d.shape
    tr = min(1024, _round_up(m, 8))
    mp = _round_up(m, tr)
    x_p = jnp.pad(x2d, ((0, mp - m), (0, 0)))

    s, sq = pl.pallas_call(
        _bn_stats_kernel,
        out_shape=(jax.ShapeDtypeStruct((1, c), jnp.float32),
                   jax.ShapeDtypeStruct((1, c), jnp.float32)),
        grid=(mp // tr,),
        in_specs=[pl.BlockSpec((tr, c), lambda i: (i, 0))],
        out_specs=(pl.BlockSpec((1, c), lambda i: (0, 0)),
                   pl.BlockSpec((1, c), lambda i: (0, 0))),
        compiler_params=_cparams(("arbitrary",)),
    )(x_p)

    mean = s / m                               # train-mode (biased) batch stats
    var = jnp.maximum(sq / m - mean * mean, 0.0)
    scale = gamma.reshape(1, c).astype(jnp.float32) * lax.rsqrt(var + eps)
    shift = beta.reshape(1, c).astype(jnp.float32) - mean * scale

    y = pl.pallas_call(
        functools.partial(_affine_leaky_kernel, slope=slope),
        out_shape=jax.ShapeDtypeStruct((mp, c), out_dtype),
        grid=(mp // tr,),
        in_specs=[pl.BlockSpec((tr, c), lambda i: (i, 0)),
                  pl.BlockSpec((1, c), lambda i: (0, 0)),
                  pl.BlockSpec((1, c), lambda i: (0, 0))],
        out_specs=pl.BlockSpec((tr, c), lambda i: (i, 0)),
        compiler_params=_cparams(("parallel",)),
    )(x_p, scale, shift)
    return y[:m]


# --------------------- LPIPS stage distance (tiled over HW, dual-view input) ---------------------

def _lpips_stage_kernel(f0_ref, f1_ref, w_ref, o_ref, *, inv_hw):
    @pl.when(pl.program_id(0) == 0)
    def _():
        o_ref[...] = jnp.zeros_like(o_ref)
    f0 = f0_ref[...].astype(jnp.float32)                      # (N, thw, C)
    f1 = f1_ref[...].astype(jnp.float32)
    n0 = f0 * lax.rsqrt(jnp.sum(f0 * f0, axis=-1, keepdims=True) + 1e-10)
    n1 = f1 * lax.rsqrt(jnp.sum(f1 * f1, axis=-1, keepdims=True) + 1e-10)
    d = (n0 - n1) ** 2
    lin = jnp.sum(d * w_ref[...], axis=-1)                    # 1x1 "lin" conv, out channel = 1
    o_ref[...] += jnp.sum(lin, axis=-1, keepdims=True) * inv_hw


def lpips_stage(fcat, n, w):
    # fcat: (2N, HW, C) — both towers concatenated; read via two offset BlockSpecs.
    n2, hw, c = fcat.shape
    thw = min(2048, _round_up(hw, 8))
    hwp = _round_up(hw, thw)
    fp = jnp.pad(fcat, ((0, 0), (0, hwp - hw), (0, 0))) if hwp != hw else fcat
    return pl.pallas_call(
        functools.partial(_lpips_stage_kernel, inv_hw=1.0 / hw),
        out_shape=jax.ShapeDtypeStruct((n, 1), jnp.float32),
        grid=(hwp // thw,),
        in_specs=[pl.BlockSpec((n, thw, c), lambda i: (0, i, 0)),
                  pl.BlockSpec((n, thw, c), lambda i: (1, i, 0)),
                  pl.BlockSpec((1, 1, c), lambda i: (0, 0, 0))],
        out_specs=pl.BlockSpec((n, 1), lambda i: (0, 0)),
        compiler_params=_cparams(("arbitrary",)),
    )(fp, fp, w)


# --------------------- tiled streaming reductions ---------------------

def _absdiff_sum_kernel(x_ref, r_ref, o_ref):
    @pl.when(pl.program_id(0) == 0)
    def _():
        o_ref[...] = jnp.zeros_like(o_ref)
    o_ref[...] += jnp.sum(jnp.abs(x_ref[...] - r_ref[...]))


def abs_diff_sum(x, r):
    """sum(|x - r|) over all elements (tiled streaming reduction)."""
    total = x.size
    lanes = 128
    rows = _round_up(pl.cdiv(total, lanes), 8)
    tr = min(2048, rows)
    rows = _round_up(rows, tr)

    def prep(t):
        flat = t.reshape(-1).astype(jnp.float32)
        flat = jnp.pad(flat, (0, rows * lanes - total))
        return flat.reshape(rows, lanes)

    out = pl.pallas_call(
        _absdiff_sum_kernel,
        out_shape=jax.ShapeDtypeStruct((1, 1), jnp.float32),
        grid=(rows // tr,),
        in_specs=[pl.BlockSpec((tr, lanes), lambda i: (i, 0)),
                  pl.BlockSpec((tr, lanes), lambda i: (i, 0))],
        out_specs=pl.BlockSpec((1, 1), lambda i: (0, 0)),
        compiler_params=_cparams(("arbitrary",)),
    )(prep(x), prep(r))
    return out[0, 0]


def _kl_kernel(mu_ref, lv_ref, o_ref):
    @pl.when(pl.program_id(0) == 0)
    def _():
        o_ref[...] = jnp.zeros_like(o_ref)
    mu = mu_ref[...]
    lv = lv_ref[...]
    o_ref[...] += 0.5 * jnp.sum(mu * mu + jnp.exp(lv) - 1.0 - lv,
                                axis=-1, keepdims=True)


def kl_per_sample(mu2d, lv2d):
    n, d = mu2d.shape
    td = min(4096, _round_up(d, 128))
    dp = _round_up(d, td)
    mu_p = jnp.pad(mu2d, ((0, 0), (0, dp - d)))               # zero pads contribute exactly 0
    lv_p = jnp.pad(lv2d, ((0, 0), (0, dp - d)))
    return pl.pallas_call(
        _kl_kernel,
        out_shape=jax.ShapeDtypeStruct((n, 1), jnp.float32),
        grid=(dp // td,),
        in_specs=[pl.BlockSpec((n, td), lambda i: (0, i)),
                  pl.BlockSpec((n, td), lambda i: (0, i))],
        out_specs=pl.BlockSpec((n, 1), lambda i: (0, 0)),
        compiler_params=_cparams(("arbitrary",)),
    )(mu_p, lv_p)


# --------------------- GAN losses (tiny logits -> plain jnp, per review) ---------------------

def _softplus(x):
    return jnp.maximum(x, 0.0) + jnp.log1p(jnp.exp(-jnp.abs(x)))


def hinge_d_loss(logits_real, logits_fake):
    return 0.5 * (jnp.mean(jnp.maximum(0.0, 1.0 - logits_real)) +
                  jnp.mean(jnp.maximum(0.0, 1.0 + logits_fake)))


def vanilla_d_loss(logits_real, logits_fake):
    return 0.5 * (jnp.mean(_softplus(-logits_real)) + jnp.mean(_softplus(logits_fake)))


# --------------------- LPIPS (synthetic VGG16, batched towers) ---------------------

_VGG_STAGES = ((64, 64), (128, 128), (256, 256, 256), (512, 512, 512), (512, 512, 512))
_LPIPS_SHIFT = jnp.array([-0.030, -0.088, -0.188], jnp.float32)
_LPIPS_SCALE = jnp.array([0.458, 0.448, 0.450], jnp.float32)


def _vgg_features(x, vgg_params):
    feats = []
    h = x
    idx = 0
    for s, stage in enumerate(_VGG_STAGES):
        if s > 0:
            h = maxpool2x2(h)
        for _ in stage:
            w, b = vgg_params[idx]
            pv = _LPIPS_SHIFT if idx == 0 else None   # shift-valued border (ScalingLayer fold)
            h = conv2d(h, w, b, kh=3, kw=3, stride=1, pad=1, act="relu",
                       out_dtype=jnp.bfloat16, pad_vec=pv)
            idx += 1
        feats.append(h)   # relu1_2, relu2_2, relu3_3, relu4_3, relu5_3
    return feats


def lpips(x_cat, n, vgg_params, lin_weights):
    # x_cat: (2N, H, W, 3) bf16 in [-1, 1]; ScalingLayer is folded into conv1 weights/bias.
    feats = _vgg_features(x_cat, vgg_params)
    val = None
    for k, f in enumerate(feats):
        n2, h, w, c = f.shape
        f2 = f.reshape(n2, h * w, c)
        r = lpips_stage(f2, n, lin_weights[k])
        val = r if val is None else val + r
    return val   # (N, 1) — same per-sample scalar as torch's (N,1,1,1)


# --------------------- NLayerDiscriminator (PatchGAN) ---------------------

def discriminator(x, dparams):
    # Conv(3->64,s2)+LReLU, then 3x [Conv(s2/s2/s1, bias=False)+BN+LReLU], then Conv(->1)
    w0, b0 = dparams["conv"][0]
    h = conv2d(x, w0, b0, kh=4, kw=4, stride=2, pad=1, act="leaky", out_dtype=jnp.bfloat16)
    strides = (2, 2, 1)
    for i in range(3):
        w, _unused_b = dparams["conv"][i + 1]          # bias=False on BN-fed convs
        g, beta = dparams["bn"][i]
        h = conv2d(h, w, None, kh=4, kw=4, stride=strides[i], pad=1, act=None,
                   out_dtype=jnp.bfloat16)
        n, oh, ow, c = h.shape
        h = batchnorm_leaky(h.reshape(n * oh * ow, c), g, beta).reshape(n, oh, ow, c)
    w4, b4 = dparams["conv"][4]
    return conv2d(h, w4, b4, kh=4, kw=4, stride=1, pad=1, act=None,
                  out_dtype=jnp.float32)               # logits


# --------------------- parameters (deterministic, synthetic, kernel-ready layout) ---------------------

def _pack_conv(w, b):
    """(KH,KW,Cin,Cout) f32 -> ((KH*KW, max(Cin,8), Cout) bf16, (1,Cout) f32 or None)."""
    kh, kw, cin, cout = w.shape
    cin_p = max(cin, 8)
    if cin_p != cin:
        w = jnp.pad(w, ((0, 0), (0, 0), (0, cin_p - cin), (0, 0)))
    wflat = w.reshape(kh * kw, cin_p, cout).astype(jnp.bfloat16)
    bias = None if b is None else b.reshape(1, cout).astype(jnp.float32)
    return wflat, bias


def init_params(key):
    params = {}
    # VGG16 conv stack (He init — stands in for pretrained features)
    vgg = []
    cin = 3
    li = 0
    for stage in _VGG_STAGES:
        for cout in stage:
            k = jax.random.fold_in(key, 100 + li)
            w = jax.random.normal(k, (3, 3, cin, cout), jnp.float32) * jnp.sqrt(2.0 / (9 * cin))
            b = jnp.zeros((cout,), jnp.float32)
            if li == 0:
                # Exact LPIPS ScalingLayer fold: conv over shift-padded raw input with
                # W' = W/scale and b' = b - sum_taps W'*shift  ==  zero-padded conv of (x-shift)/scale.
                w = w / _LPIPS_SCALE.reshape(1, 1, 3, 1)
                b = b - jnp.einsum("ijco,c->o", w, _LPIPS_SHIFT)
            vgg.append(_pack_conv(w, b))
            cin = cout
            li += 1
    params["vgg"] = vgg
    # LPIPS lin layers: 1x1 conv C -> 1, no bias, non-negative weights; pre-shaped (1,1,C) f32
    params["lins"] = [
        (jnp.abs(jax.random.normal(jax.random.fold_in(key, 200 + i),
                                   (stage[-1],), jnp.float32)) * 0.1).reshape(1, 1, -1)
        for i, stage in enumerate(_VGG_STAGES)]
    # NLayerDiscriminator (weights_init: conv ~ N(0, 0.02), BN gamma ~ N(1, 0.02), beta = 0)
    disc_cfg = ((3, 64), (64, 128), (128, 256), (256, 512), (512, 1))
    conv = []
    for i, (ci, co) in enumerate(disc_cfg):
        k = jax.random.fold_in(key, 300 + i)
        w = jax.random.normal(k, (4, 4, ci, co), jnp.float32) * 0.02
        has_bias = i in (0, 4)                          # BN-fed convs use bias=False
        conv.append(_pack_conv(w, jnp.zeros((co,), jnp.float32) if has_bias else None))
    bn = []
    for i, c in enumerate((128, 256, 512)):
        g = 1.0 + 0.02 * jax.random.normal(jax.random.fold_in(key, 400 + i), (c,), jnp.float32)
        bn.append((g, jnp.zeros((c,), jnp.float32)))
    params["disc"] = {"conv": conv, "bn": bn}
    return params


# --------------------- posterior ---------------------

class DiagonalGaussianDistribution:
    def __init__(self, parameters):            # parameters: (N, 2*Z, h, w), NCHW
        mean, logvar = jnp.split(parameters, 2, axis=1)
        self.mean = mean
        self.logvar = jnp.clip(logvar, -30.0, 20.0)

    def kl(self):
        n = self.mean.shape[0]
        return kl_per_sample(self.mean.reshape(n, -1).astype(jnp.float32),
                             self.logvar.reshape(n, -1).astype(jnp.float32))[:, 0]


# --------------------- main module ---------------------

class LPIPSWithDiscriminator:
    def __init__(self, disc_start, logvar_init=0.0, kl_weight=1.0, pixelloss_weight=1.0,
                 disc_num_layers=3, disc_in_channels=3, disc_factor=1.0, disc_weight=1.0,
                 perceptual_weight=1.0, use_actnorm=False, disc_conditional=False,
                 disc_loss="hinge"):
        assert disc_loss in ("hinge", "vanilla")
        assert not use_actnorm      # TODO(synk): ActNorm-normalized discriminator not implemented
        assert disc_num_layers == 3 and disc_in_channels == 3
        self.kl_weight = kl_weight
        self.pixel_weight = pixelloss_weight     # stored but unused, as in the reference forward
        self.perceptual_weight = perceptual_weight
        self.logvar = jnp.asarray(logvar_init, jnp.float32)   # constant here (learnable in torch)
        self.discriminator_iter_start = disc_start
        self.disc_loss_type = disc_loss
        self.disc_factor = disc_factor
        self.discriminator_weight = disc_weight
        self.disc_conditional = disc_conditional
        self.params = init_params(jax.random.PRNGKey(0))

    def __call__(self, inputs, reconstructions, posteriors, optimizer_idx, global_step,
                 last_layer=None, cond=None, split="train", weights=None):
        n, c, h, w = inputs.shape
        x_nhwc = jnp.transpose(inputs, (0, 2, 3, 1)).astype(jnp.float32)
        r_nhwc = jnp.transpose(reconstructions, (0, 2, 3, 1)).astype(jnp.float32)

        per_sample_elems = c * h * w
        total_elems = n * per_sample_elems

        # sum |x - r| via a tiled Pallas reduction; the p_loss / logvar terms are scalar glue
        # (mathematically identical to summing the broadcast tensors of the reference).
        rec_abs_sum = abs_diff_sum(x_nhwc, r_nhwc)
        if self.perceptual_weight > 0:
            x_cat = jnp.concatenate([x_nhwc, r_nhwc], axis=0).astype(jnp.bfloat16)
            p_loss = lpips(x_cat, n, self.params["vgg"], self.params["lins"])      # (N, 1)
            rec_total = rec_abs_sum + self.perceptual_weight * per_sample_elems * jnp.sum(p_loss)
        else:
            rec_total = rec_abs_sum

        nll_sum = rec_total * jnp.exp(-self.logvar) + self.logvar * total_elems
        nll_loss = nll_sum / n
        if weights is None:
            weighted_nll_loss = nll_loss
        else:  # scalar weights supported (per-element weights would need an extra kernel input)
            weighted_nll_loss = jnp.asarray(weights, jnp.float32) * nll_loss
        rec_loss_mean = rec_total / total_elems

        kl = posteriors.kl()
        kl_loss = jnp.sum(kl) / kl.shape[0]

        if optimizer_idx == 0:
            assert cond is None and not self.disc_conditional
            logits_fake = discriminator(r_nhwc, self.params["disc"])
            g_loss = -jnp.mean(logits_fake)

            # TODO(synk): calculate_adaptive_weight needs torch.autograd.grad of nll/g_loss w.r.t.
            # the generator's last layer (graph not available here); mirror the eval-time fallback.
            d_weight = jnp.asarray(0.0, jnp.float32)

            disc_factor = self.disc_factor if global_step >= self.discriminator_iter_start else 0.0
            loss = weighted_nll_loss + self.kl_weight * kl_loss + d_weight * disc_factor * g_loss
            log = {
                f"{split}/total_loss": loss,
                f"{split}/logvar": self.logvar,
                f"{split}/kl_loss": kl_loss,
                f"{split}/nll_loss": nll_loss,
                f"{split}/rec_loss": rec_loss_mean,
                f"{split}/d_weight": d_weight,
                f"{split}/disc_factor": jnp.asarray(disc_factor, jnp.float32),
                f"{split}/g_loss": g_loss,
            }
            return loss, log

        if optimizer_idx == 1:
            assert cond is None
            # Separate discriminator calls (not batched) to preserve per-call BatchNorm stats.
            logits_real = discriminator(x_nhwc, self.params["disc"])
            logits_fake = discriminator(r_nhwc, self.params["disc"])
            disc_factor = self.disc_factor if global_step >= self.discriminator_iter_start else 0.0
            if self.disc_loss_type == "hinge":
                d_core = hinge_d_loss(logits_real, logits_fake)
            else:
                d_core = vanilla_d_loss(logits_real, logits_fake)
            d_loss = disc_factor * d_core
            log = {
                f"{split}/disc_loss": d_loss,
                f"{split}/logits_real": jnp.mean(logits_real),
                f"{split}/logits_fake": jnp.mean(logits_fake),
            }
            return d_loss, log


# --------------------- demo ---------------------

if __name__ == "__main__":
    key = jax.random.PRNGKey(0)
    k1, k2, k3 = jax.random.split(key, 3)
    # 32x32 is the smallest spatial size for which the 3-layer PatchGAN produces valid logits.
    inputs = jnp.tanh(jax.random.normal(k1, (2, 3, 32, 32), jnp.float32))
    reconstructions = jnp.tanh(jax.random.normal(k2, (2, 3, 32, 32), jnp.float32))
    posterior_params = 0.1 * jax.random.normal(k3, (2, 8, 8, 8), jnp.float32)  # mean ++ logvar
    posteriors = DiagonalGaussianDistribution(posterior_params)

    loss_mod = LPIPSWithDiscriminator(disc_start=0)

    loss_g, log_g = loss_mod(inputs, reconstructions, posteriors,
                             optimizer_idx=0, global_step=10, split="train")
    loss_d, log_d = loss_mod(inputs, reconstructions, posteriors,
                             optimizer_idx=1, global_step=10, split="train")

    jax.block_until_ready((loss_g, log_g, loss_d, log_d))
    print("KERNEL_OK")
</pallas_src>

<mosaic_0001>
module attributes {stable_mosaic.version = 11 : i64} {
  func.func @_absdiff_sum_kernel(%arg0: i32, %arg1: memref<48x128xf32, #tpu.memory_space<vmem>>, %arg2: memref<48x128xf32, #tpu.memory_space<vmem>>, %arg3: memref<1x1xf32, #tpu.memory_space<vmem>>) attributes {dimension_semantics = [#tpu.dimension_semantics<arbitrary>], iteration_bounds = array<i64: 1>, scalar_prefetch = 0 : i64, scratch_operands = 0 : i64, tpu.core_type = #tpu.core_type<tc>, window_params = [{transform_indices = @transform_0, window_bounds = array<i64: 48, 128>}, {transform_indices = @transform_1, window_bounds = array<i64: 48, 128>}, {pipeline_mode = #tpu.pipeline_mode<synchronous>, transform_indices = @transform_2, window_bounds = array<i64: 1, 1>}]} {
    %c0_i32 = arith.constant 0 : i32
    %0 = arith.cmpi eq, %arg0, %c0_i32 : i32
    %1 = arith.extui %0 : i1 to i32
    %c0_i32_0 = arith.constant 0 : i32
    %2 = arith.cmpi ne, %1, %c0_i32_0 : i32
    scf.if %2 {
      %cst_8 = arith.constant 0.000000e+00 : f32
      %15 = vector.broadcast %cst_8 : f32 to vector<1x1xf32>
      %c0_9 = arith.constant 0 : index
      %c0_10 = arith.constant 0 : index
      %16 = vector.load %arg3[%c0_9, %c0_10] : memref<1x1xf32, #tpu.memory_space<vmem>>, vector<1x1xf32>
      tpu.vector_store %arg3[%c0_9, %c0_10], %15 {strides = array<i32>} : memref<1x1xf32, #tpu.memory_space<vmem>>, vector<1x1xf32>,
    } else {
    }
    %c0 = arith.constant 0 : index
    %c0_1 = arith.constant 0 : index
    %3 = vector.load %arg3[%c0, %c0_1] : memref<1x1xf32, #tpu.memory_space<vmem>>, vector<1x1xf32>
    %c0_2 = arith.constant 0 : index
    %c0_3 = arith.constant 0 : index
    %4 = vector.load %arg1[%c0_2, %c0_3] : memref<48x128xf32, #tpu.memory_space<vmem>>, vector<48x128xf32>
    %c0_4 = arith.constant 0 : index
    %c0_5 = arith.constant 0 : index
    %5 = vector.load %arg2[%c0_4, %c0_5] : memref<48x128xf32, #tpu.memory_space<vmem>>, vector<48x128xf32>
    %6 = arith.subf %4, %5 : vector<48x128xf32>
    %7 = math.absf %6 : vector<48x128xf32>
    %8 = vector.shape_cast %7 : vector<48x128xf32> to vector<1x48x128xf32>
    %cst = arith.constant dense<0.000000e+00> : vector<1xf32>
    %9 = vector.multi_reduction <add>, %8, %cst [1, 2] : vector<1x48x128xf32> to vector<1xf32>
    %10 = vector.shape_cast %9 : vector<1xf32> to vector<1x1x1xf32>
    %11 = vector.extract %10[0, 0, 0] : f32 from vector<1x1x1xf32>
    %12 = vector.broadcast %11 : f32 to vector<1x1xf32>
    %13 = arith.addf %3, %12 : vector<1x1xf32>
    %c0_6 = arith.constant 0 : index
    %c0_7 = arith.constant 0 : index
    %14 = vector.load %arg3[%c0_6, %c0_7] : memref<1x1xf32, #tpu.memory_space<vmem>>, vector<1x1xf32>
    tpu.vector_store %arg3[%c0_6, %c0_7], %13 {strides = array<i32>} : memref<1x1xf32, #tpu.memory_space<vmem>>, vector<1x1xf32>,
    return
  }
  func.func @transform_0(%arg0: i32) -> (i32, i32) {
    %c0_i32 = arith.constant 0 : i32
    %c0_i32_0 = arith.constant 0 : i32
    return %arg0, %c0_i32 : i32, i32
  }
  func.func @transform_1(%arg0: i32) -> (i32, i32) {
    %c0_i32 = arith.constant 0 : i32
    %c0_i32_0 = arith.constant 0 : i32
    return %arg0, %c0_i32 : i32, i32
  }
  func.func @transform_2(%arg0: i32) -> (i32, i32) {
    %c0_i32 = arith.constant 0 : i32
    %c0_i32_0 = arith.constant 0 : i32
    %c0_i32_1 = arith.constant 0 : i32
    return %c0_i32, %c0_i32_0 : i32, i32
  }
}

</mosaic_0001>

<bundles_post_ra>
// kernel: tpu_custom_call.1
= control target key start
LH: loop header
LB: loop body
LE: loop exit
PB: predicated region body
PF: predicated region fallthrough
CT: control target
= control target key end

     0   :  { %7 = vsyncpa [#allocation3], 0  ;;  %s211_s0 = inlined_call_operand.hbm [shape: f32[48,128], index: 0, kind: input, shape index: {}]   ;;  %s212_s1 = inlined_call_operand.hbm [shape: f32[48,128], index: 1, kind: input, shape index: {}]   ;;  %s213_s2 = inlined_call_operand.hbm [shape: f32[1,1], index: 2, kind: output, shape index: {}]  }
   0x1   :  { %8 = vsyncpa [#allocation6], 0 }
   0x2   :  { %9 = vsyncpa [#allocation4], 0  ;;  %s179_s9 = smov [#allocation2]  }
   0x3   :  { %s15_s10 = sshll.u32 %s179_s9, 4  ;;  %s16_s10 = int_to_ptr.vmem [resolvable:$true] %s15_s10 }
   0x4   :  { %s121_s11 = scalar_lea.vmem %s16_s10, 768  ;;  %p126_p1 = scmp.lt.s32.totalorder %s16_s10, %s16_s10 }
   0x5   :  { %p122_p0 = scmp.ne.s32.totalorder %s16_s10, %s121_s11  ;;  %p127_p2 = scmp.lt.s32.totalorder %s121_s11, %s121_s11 }
   0x7   :  { %p128_p3 = por %p127_p2, %p126_p1 }
   0x9   :  { %p129_p4 = pnand %p128_p3, %p122_p0 }
   0xb   :  { %132 = shalt.err (!%p129_p4)
}
   0xc   :  { %s180_s12 = smov 128   ;;  %s181_s13 = smov 8  }
   0xd   :  { %21 = dma.hbm_to_vmem [thread:$0]  %s211_s0, 768, %s16_s10, [#allocation3], %s180_s12, %s180_s12, %s181_s13  }
   0xe   :  { %s182_s16 = smov [#allocation5]  }
   0xf   :  { %s27_s17 = sshll.u32 %s182_s16, 4  ;;  %s28_s17 = int_to_ptr.vmem [resolvable:$true] %s27_s17 }
  0x10   :  { %s141_s18 = scalar_lea.vmem %s28_s17, 768  ;;  %p146_p6 = scmp.lt.s32.totalorder %s28_s17, %s28_s17 }
  0x11   :  { %p142_p5 = scmp.ne.s32.totalorder %s28_s17, %s141_s18  ;;  %p147_p7 = scmp.lt.s32.totalorder %s141_s18, %s141_s18 }
  0x13   :  { %p148_p8 = por %p147_p7, %p146_p6 }
  0x15   :  { %p149_p9 = pnand %p148_p8, %p142_p5 }
  0x17   :  { %152 = shalt.err (!%p149_p9)
}
  0x18   :  { %33 = dma.hbm_to_vmem [thread:$0]  %s212_s1, 768, %s28_s17, [#allocation6], %s180_s12, %s180_s12, %s181_s13  }
  0x19   :  { %173 = dma.done.wait [#allocation3], 768  }
  0x1a   :  { %174 = vsyncadd [#allocation3], 4294966528 }
  0x1b   :  { %175 = dma.done.wait [#allocation6], 768  }
  0x1c   :  { %176 = vsyncadd [#allocation6], 4294966528  ;;  %v47_v0 = vld [vmem:[#allocation2] sm:$0xff]  ;;  %v48_v1 = vld [vmem:[#allocation2 + $0x8] sm:$0xff]  ;;  %vm44_vm0 = vcmask 0   ;;  %v183_v29 = vmov 0.0  }
  0x1d   :  { %v49_v2 = vld [vmem:[#allocation2 + $0x10] sm:$0xff]  ;;  %v50_v3 = vld [vmem:[#allocation2 + $0x18] sm:$0xff]  ;;  %v51_v4 = vld [vmem:[#allocation2 + $0x20] sm:$0xff]  ;;  %45 = vst.msk [vmem:[#allocation7] sm:$0x1] %vm44_vm0, %v183_v29  ;;  %s184_s0 = smov [#allocation7]  }
  0x1e   :  { %v53_v5 = vld [vmem:[#allocation5] sm:$0xff]  ;;  %v54_v6 = vld [vmem:[#allocation5 + $0x8] sm:$0xff]  ;;  %v55_v7 = vld [vmem:[#allocation5 + $0x10] sm:$0xff]  ;;  %s95_s1 = sshll.u32 %s184_s0, 4  ;;  %s96_s1 = int_to_ptr.vmem [resolvable:$true] %s95_s1 }
  0x1f   :  { %v56_v8 = vld [vmem:[#allocation5 + $0x18] sm:$0xff]  ;;  %v57_v9 = vld [vmem:[#allocation5 + $0x20] sm:$0xff]  ;;  %v59_v10 = vsub.f32 %v47_v0, %v53_v5  ;;  %v60_v11 = vsub.f32 %v48_v1, %v54_v6  ;;  %v61_v12 = vsub.f32 %v49_v2, %v55_v7  ;;  %v58_v14 = vld [vmem:[#allocation5 + $0x28] sm:$0xff]  ;;  %s153_s22 = scalar_lea.vmem %s96_s1, 16  ;;  %s157_s23 = scalar_lea.vmem %s96_s1, 32 }
  0x20   :  { %v52_v13 = vld [vmem:[#allocation2 + $0x28] sm:$0xff]  ;;  %v62_v15 = vsub.f32 %v50_v3, %v56_v8  ;;  %v63_v16 = vsub.f32 %v51_v4, %v57_v9  ;;  %p154_p10 = scmp.ne.s32.totalorder %s96_s1, %s153_s22  ;;  %p158_p11 = scmp.lt.s32.totalorder %s96_s1, %s96_s1 }
  0x21   :  { %v65_v17 = vand.u32 2147483647, %v59_v10  ;;  %v66_v18 = vand.u32 2147483647, %v60_v11  ;;  %v67_v19 = vand.u32 2147483647, %v61_v12  ;;  %v64_v20 = vsub.f32 %v52_v13, %v58_v14  ;;  %p159_p12 = scmp.lt.s32.totalorder %s157_s23, %s153_s22 }
  0x22   :  { %v68_v21 = vand.u32 2147483647, %v62_v15  ;;  %v69_v23 = vand.u32 2147483647, %v63_v16 }
  0x23   :  { %v71_v22 = vadd.f32 %v66_v18, %v65_v17  ;;  %v70_v25 = vand.u32 2147483647, %v64_v20  ;;  %p160_p13 = por %p159_p12, %p158_p11 }
  0x24   :  { %v46_v37 = vld [vmem:[#allocation7] sm:$0x1] }
  0x25   :  { %v72_v24 = vadd.f32 %v71_v22, %v67_v19  ;;  %p161_p0 = pnand %p160_p13, %p154_p10 }
  0x27   :  { %v73_v26 = vadd.f32 %v72_v24, %v68_v21 }
  0x29   :  { %v74_v27 = vadd.f32 %v73_v26, %v69_v23 }
  0x2b   :  { %v75_v28 = vadd.f32 %v74_v27, %v70_v25 }
  0x2d   :  { %76 = vadd.xlane.f32.xlu0 %v75_v28 }
  0xb6   :  { %v77_v30 = vpop.xlane.xlu0 %76 }
  0xb7   :  { %v78_v31 = vrot.slane %v77_v30, 4 }
  0xb9   :  { %v79_v32 = vadd.f32 %v78_v31, %v77_v30 }
  0xbb   :  { %v80_v33 = vrot.slane %v79_v32, 2 }
  0xbd   :  { %v81_v34 = vadd.f32 %v80_v33, %v79_v32 }
  0xbf   :  { %v82_v35 = vrot.slane %v81_v34, 1 }
  0xc1   :  { %v83_v36 = vadd.f32 %v82_v35, %v81_v34 }
  0xc3   :  { %105 = vpush %v83_v36 }
  0xf4   :  { %s106_s21 = spop %105 }
  0xf5   :  { %v85_v38 = vstv %s106_s21 }
  0xf6   :  { %v86_v39 = vadd.f32 %v85_v38, %v46_v37 }
  0xf8   :  { %88 = vst.msk [vmem:[#allocation7] sm:$0x1] %vm44_vm0, %v86_v39 }
  0xf9   :  { %164 = shalt.err (!%p161_p0)
}
  0xfa   :  { %98 = dma.vmem_to_hbm [thread:$0]  %s96_s1, 16, %s213_s2, [#allocation4]  }
  0xfb   :  { %177 = dma.done.wait [#allocation4], 16  }
  0xfc   :  { %178 = vsyncadd [#allocation4], 4294967280 }
  0xfd   :  { %102 = vsyncpa [#allocation3], 1 }
  0xfe   :  { %103 = vsyncpa [#allocation6], 1 }
  0xff   :  { %104 = vsyncpa [#allocation4], 1 }

</bundles_post_ra>
